<compile_context>
chip_gen: v5e
topology: v5e:2x2
jax: 0.10.0
libtpu: 0.0.40
codegen_flags: <defaults>
</compile_context>

<pallas_src>
import functools

import jax
import jax.numpy as jnp
from jax import lax
from jax.experimental import pallas as pl
from jax.experimental.pallas import tpu as pltpu


def pipeline_kernel(tok_ref,                 # scalar prefetch: (N_pad,) int32, SMEM
                    emb_hbm,                 # (V, H) f32, stays in HBM (pl.ANY)
                    wenc_ref, benc_ref,      # (H, H) bf16 / (1, H) f32, VMEM-resident
                    wcls_ref, bcls_ref,      # (H, LP) bf16 / (1, LP) f32, VMEM-resident
                    lab_ref,                 # (TM, 1) int32, streamed
                    logpa_ref,               # (TM, LP) bf16 out
                    pred_ref,                # (TM, 1) int32 out
                    losspart_ref,            # (8, 128) f32 out (per-tile partial NLL)
                    x_buf, gsem,             # scratch: (TM, H) f32 + one DMA semaphore
                    *, num_labels):
    tm = x_buf.shape[0]
    base = pl.program_id(0) * tm

    # --- fused embedding gather: TM single-row DMAs HBM -> VMEM --------------
    def _issue(r, c):
        tok = tok_ref[base + r]
        pltpu.make_async_copy(emb_hbm.at[pl.ds(tok, 1)],
                              x_buf.at[pl.ds(r, 1)], gsem.at[0]).start()
        return c
    lax.fori_loop(0, tm, _issue, 0)

    def _drain(r, c):
        # dummy .at[0] source: the wait only needs the copy shape to decrement.
        pltpu.make_async_copy(emb_hbm.at[pl.ds(0, 1)],
                              x_buf.at[pl.ds(r, 1)], gsem.at[0]).wait()
        return c
    lax.fori_loop(0, tm, _drain, 0)

    x = x_buf[...].astype(jnp.bfloat16)      # bf16 only for the MXU operands

    # --- encoder hot path: (TM,H)bf16 @ (H,H)bf16 -> f32, +bias, relu (f32) --
    h = jnp.dot(x, wenc_ref[...], preferred_element_type=jnp.float32)
    h = jnp.maximum(h + benc_ref[...], 0.0)

    # --- classifier hot path: (TM,H)bf16 @ (H,LP)bf16 -> f32, +bias ----------
    score = jnp.dot(h.astype(jnp.bfloat16), wcls_ref[...],
                    preferred_element_type=jnp.float32) + bcls_ref[...]

    lp = score.shape[1]
    col = lax.broadcasted_iota(jnp.int32, (tm, lp), 1)
    valid = col < num_labels                  # mask padded label columns
    score = jnp.where(valid, score, jnp.float32(-1e30))

    # --- log_softmax over the (padded) label axis, all f32 -------------------
    m = jnp.max(score, axis=-1, keepdims=True)
    e = jnp.where(valid, jnp.exp(score - m), 0.0)
    lse = m + jnp.log(jnp.sum(e, axis=-1, keepdims=True))
    log_pa = score - lse
    logpa_ref[...] = log_pa.astype(jnp.bfloat16)   # cast only at the store

    # --- pred = first index achieving the row max (matches jnp.argmax) -------
    colf = col.astype(jnp.float32)
    pred = jnp.min(jnp.where(score == m, colf, jnp.float32(lp)),
                   axis=-1, keepdims=True)
    pred_ref[...] = pred.astype(jnp.int32)

    # --- RoleLoss partial: sum over this tile of -log_pa[r, label[r]] --------
    # Padding rows carry label = -1 and never match any column -> contribute 0.
    onehot = col == lab_ref[...]
    part = -jnp.sum(jnp.where(onehot, log_pa, 0.0))        # f32 accumulation
    losspart_ref[...] = part + jnp.zeros((8, 128), jnp.float32)


def _vmem_capacity_bytes():
    try:
        return int(pltpu.get_tpu_info().vmem_capacity_bytes)
    except Exception:
        return 64 << 20                       # conservative fallback (v7x physical)


def pipeline_forward(tok_idx, role_label, params, *, tm=2048):
    """tok_idx: (B, S) int32, role_label: (B, S) int32."""
    B, S = tok_idx.shape
    emb = params["emb"].astype(jnp.float32)   # (V, H) f32 HBM table (row-DMA friendly)
    H = emb.shape[1]
    L = params["w_cls"].shape[1]
    LP = 128 * pl.cdiv(L, 128)                # lane-dense padded label dim
    N = B * S

    # --- tile sizing: multiple of 16 (bf16 tiling), keep >= 2 tiles for v7x --
    tm = max(16, (tm // 16) * 16)
    tm = min(tm, max(16, ((((N + 1) // 2) + 15) // 16) * 16))
    n_tiles = pl.cdiv(N, tm)
    N_pad = n_tiles * tm

    tok_flat = tok_idx.reshape(-1).astype(jnp.int32)
    lab_flat = role_label.reshape(-1).astype(jnp.int32)
    if N_pad != N:
        tok_flat = jnp.concatenate([tok_flat, jnp.zeros((N_pad - N,), jnp.int32)])
        lab_flat = jnp.concatenate([lab_flat, jnp.full((N_pad - N,), -1, jnp.int32)])
    labels = lab_flat.reshape(N_pad, 1)

    w_enc = params["w_enc"].astype(jnp.bfloat16)          # (H, H)
    b_enc = params["b_enc"].astype(jnp.float32).reshape(1, H)
    w_cls = params["w_cls"].astype(jnp.bfloat16)          # (H, L)
    b_cls = params["b_cls"].astype(jnp.float32).reshape(1, L)
    if LP != L:
        w_cls = jnp.pad(w_cls, ((0, 0), (0, LP - L)))
        b_cls = jnp.pad(b_cls, ((0, 0), (0, LP - L)))

    # --- VMEM budget, generation-aware cap ------------------------------------
    lanes = 128
    tile_bytes = (tm * H * 4                   # x_buf gather scratch (single buffer)
                  + 2 * tm * LP * 2            # log_pa out block (bf16, double-buffered)
                  + 2 * tm * lanes * 4         # pred out block (lane-padded i32)
                  + 2 * tm * lanes * 4         # labels in block (lane-padded i32)
                  + 2 * 8 * lanes * 4)         # loss-partial out block
    resident_bytes = 2 * (H * H * 2 + H * LP * 2 + 8 * H * 4 + 8 * LP * 4)
    cap = max(24 << 20, min(_vmem_capacity_bytes() - (16 << 20), 100 << 20))
    vmem_limit = int(min(max(tile_bytes + resident_bytes + (8 << 20), 16 << 20), cap))

    flops = 2 * N_pad * H * H + 2 * N_pad * H * LP
    transcendentals = N_pad * LP + N_pad
    bytes_accessed = (N_pad * H * 4            # fused gather reads
                      + H * H * 2 + H * LP * 2 + (H + LP) * 4
                      + N_pad * 4 * 2          # tok_idx + labels
                      + N_pad * LP * 2         # bf16 log_pa store
                      + N_pad * 4              # pred
                      + n_tiles * 8 * 128 * 4)

    kernel = functools.partial(pipeline_kernel, num_labels=L)

    log_pa_pad, pred_pad, loss_part = pl.pallas_call(
        kernel,
        out_shape=(
            jax.ShapeDtypeStruct((N_pad, LP), jnp.bfloat16),     # log_pa (lane-dense)
            jax.ShapeDtypeStruct((N_pad, 1), jnp.int32),         # pred
            jax.ShapeDtypeStruct((n_tiles * 8, 128), jnp.float32),  # per-tile NLL partials
        ),
        grid_spec=pltpu.PrefetchScalarGridSpec(
            num_scalar_prefetch=1,
            grid=(n_tiles,),
            in_specs=[
                pl.BlockSpec(memory_space=pl.ANY),               # emb table (HBM)
                pl.BlockSpec((H, H), lambda i, tok: (0, 0)),     # encoder weight (resident)
                pl.BlockSpec((1, H), lambda i, tok: (0, 0)),     # encoder bias (resident)
                pl.BlockSpec((H, LP), lambda i, tok: (0, 0)),    # classifier weight (resident)
                pl.BlockSpec((1, LP), lambda i, tok: (0, 0)),    # classifier bias (resident)
                pl.BlockSpec((tm, 1), lambda i, tok: (i, 0)),    # role labels (streamed)
            ],
            out_specs=(
                pl.BlockSpec((tm, LP), lambda i, tok: (i, 0)),
                pl.BlockSpec((tm, 1), lambda i, tok: (i, 0)),
                pl.BlockSpec((8, 128), lambda i, tok: (i, 0)),
            ),
            scratch_shapes=[
                pltpu.VMEM((tm, H), jnp.float32),                # gathered embedding rows
                pltpu.SemaphoreType.DMA((1,)),                   # gather completion sem
            ]),
        compiler_params=pltpu.CompilerParams(
            dimension_semantics=("parallel",),
            vmem_limit_bytes=vmem_limit),
        cost_estimate=pl.CostEstimate(
            flops=int(flops),
            transcendentals=int(transcendentals),
            bytes_accessed=int(bytes_accessed)),
    )(tok_flat, emb, w_enc, b_enc, w_cls, b_cls, labels)

    # Finalize outside the kernel: sum partials / GLOBAL token count.
    loss_acc = jnp.sum(loss_part[::8, 0]) / jnp.float32(N)
    pred = pred_pad[:N, 0].reshape(B, S)
    # The reference module only returns (loss, pred); log_pa (bf16) is exposed for checks.
    log_pa = log_pa_pad[:N, :L].reshape(B, S, L)
    return loss_acc, pred, log_pa


def init_params(key, vocab, hidden, num_labels):
    k1, k2, k3 = jax.random.split(key, 3)

    # xavier_uniform for weights, zeros for biases (matches init_weight()).
    def xavier(k, shape):
        fan_in, fan_out = shape
        limit = (6.0 / (fan_in + fan_out)) ** 0.5
        return jax.random.uniform(k, shape, jnp.float32, -limit, limit)

    return {
        "emb": jax.random.normal(k1, (vocab, hidden), jnp.float32) * 0.02,  # f32 rows: DMA-clean
        "w_enc": xavier(k2, (hidden, hidden)).astype(jnp.bfloat16),
        "b_enc": jnp.zeros((1, hidden), jnp.float32),
        "w_cls": xavier(k3, (hidden, num_labels)).astype(jnp.bfloat16),
        "b_cls": jnp.zeros((1, num_labels), jnp.float32),
    }


if __name__ == "__main__":
    # Small but MXU-friendly shapes: hidden a multiple of 256, label dim padded to 128
    # inside the wrapper.  N=32 so the default tm gets clamped to 16 -> 2-tile grid.
    B, S, H, L, V = 2, 16, 256, 16, 64
    key = jax.random.PRNGKey(0)
    kp, kt, kl = jax.random.split(key, 3)

    params = init_params(kp, V, H, L)
    tok_idx = jax.random.randint(kt, (B, S), 0, V, dtype=jnp.int32)
    role_label = jax.random.randint(kl, (B, S), 0, L, dtype=jnp.int32)

    loss_acc, pred, log_pa = pipeline_forward(tok_idx, role_label, params)
    jax.block_until_ready((loss_acc, pred, log_pa))

    # Cross-check against a plain-JAX reference using the same bf16-in / f32-acc math.
    N = B * S
    x_ref = params["emb"][tok_idx.reshape(-1)].astype(jnp.bfloat16)
    h_ref = jnp.maximum(
        jnp.dot(x_ref, params["w_enc"], preferred_element_type=jnp.float32)
        + params["b_enc"], 0.0)
    s_ref = jnp.dot(h_ref.astype(jnp.bfloat16), params["w_cls"],
                    preferred_element_type=jnp.float32) + params["b_cls"]
    lp_ref = jax.nn.log_softmax(s_ref, axis=-1)
    nll_ref = -jnp.mean(lp_ref[jnp.arange(N), role_label.reshape(-1)])

    # log_pa is stored bf16 -> looser tolerance; loss is accumulated in f32.
    assert jnp.allclose(log_pa.astype(jnp.float32).reshape(N, L), lp_ref,
                        atol=5e-2, rtol=5e-2)
    assert jnp.allclose(loss_acc, nll_ref, atol=3e-3, rtol=3e-3)
    assert jnp.array_equal(pred.reshape(-1),
                           jnp.argmax(lp_ref, axis=-1).astype(jnp.int32))

    print("KERNEL_OK")
</pallas_src>

<mosaic_0001>
module attributes {stable_mosaic.version = 11 : i64} {
  func.func @pipeline_kernel(%arg0: i32, %arg1: memref<32xi32, #tpu.memory_space<smem>>, %arg2: memref<64x256xf32, #tpu.memory_space<any>>, %arg3: memref<256x256xbf16, #tpu.memory_space<vmem>>, %arg4: memref<1x256xf32, #tpu.memory_space<vmem>>, %arg5: memref<256x128xbf16, #tpu.memory_space<vmem>>, %arg6: memref<1x128xf32, #tpu.memory_space<vmem>>, %arg7: memref<16x1xi32, #tpu.memory_space<vmem>>, %arg8: memref<16x128xbf16, #tpu.memory_space<vmem>>, %arg9: memref<16x1xi32, #tpu.memory_space<vmem>>, %arg10: memref<8x128xf32, #tpu.memory_space<vmem>>, %arg11: memref<16x256xf32, #tpu.memory_space<vmem>>, %arg12: memref<1x!tpu.dma_semaphore, #tpu.memory_space<semaphore_mem>>) attributes {dimension_semantics = [#tpu.dimension_semantics<parallel>], iteration_bounds = array<i64: 2>, scalar_prefetch = 1 : i64, scratch_operands = 2 : i64, tpu.core_type = #tpu.core_type<tc>, window_params = [{}, {pipeline_mode = #tpu.pipeline_mode<synchronous>, transform_indices = @transform_1, window_bounds = array<i64: 256, 256>}, {pipeline_mode = #tpu.pipeline_mode<synchronous>, transform_indices = @transform_2, window_bounds = array<i64: 1, 256>}, {pipeline_mode = #tpu.pipeline_mode<synchronous>, transform_indices = @transform_3, window_bounds = array<i64: 256, 128>}, {pipeline_mode = #tpu.pipeline_mode<synchronous>, transform_indices = @transform_4, window_bounds = array<i64: 1, 128>}, {transform_indices = @transform_5, window_bounds = array<i64: 16, 1>}, {transform_indices = @transform_6, window_bounds = array<i64: 16, 128>}, {transform_indices = @transform_7, window_bounds = array<i64: 16, 1>}, {transform_indices = @transform_8, window_bounds = array<i64: 8, 128>}]} {
    %c16_i32 = arith.constant 16 : i32
    %0 = arith.muli %arg0, %c16_i32 : i32
    %c0_i32 = arith.constant 0 : i32
    %c16_i32_0 = arith.constant 16 : i32
    %1 = arith.addi %c0_i32, %c16_i32_0 : i32
    %c1_i32 = arith.constant 1 : i32
    scf.for %arg13 = %c0_i32 to %1 step %c1_i32  : i32 {
      %61 = arith.addi %0, %arg13 : i32
      %62 = arith.index_cast %61 : i32 to index
      %63 = memref.load %arg1[%62] : memref<32xi32, #tpu.memory_space<smem>>
      %c0_i32_36 = arith.constant 0 : i32
      %c0_i32_37 = arith.constant 0 : i32
      %64 = tpu.memref_slice %arg2[%63, %c0_i32_37] : memref<64x256xf32, #tpu.memory_space<any>> -> memref<1x256xf32, #tpu.memory_space<any>>
      %c0_i32_38 = arith.constant 0 : i32
      %65 = tpu.memref_slice %arg11[%arg13, %c0_i32_38] : memref<16x256xf32, #tpu.memory_space<vmem>> -> memref<1x256xf32, #tpu.memory_space<vmem>>
      %66 = tpu.memref_slice %arg12[%c0_i32_36] : memref<1x!tpu.dma_semaphore, #tpu.memory_space<semaphore_mem>> -> memref<1x!tpu.dma_semaphore, #tpu.memory_space<semaphore_mem>>
      %67 = tpu.memref_squeeze %66 : memref<1x!tpu.dma_semaphore, #tpu.memory_space<semaphore_mem>> -> memref<!tpu.dma_semaphore, #tpu.memory_space<semaphore_mem>>
      tpu.enqueue_dma source(%64 : memref<1x256xf32, #tpu.memory_space<any>>) target(%65 : memref<1x256xf32, #tpu.memory_space<vmem>>) target_semaphore(%67 : memref<!tpu.dma_semaphore, #tpu.memory_space<semaphore_mem>>)
    }
    %c16_i32_1 = arith.constant 16 : i32
    %c0_i32_2 = arith.constant 0 : i32
    %c16_i32_3 = arith.constant 16 : i32
    %2 = arith.addi %c0_i32_2, %c16_i32_3 : i32
    %c1_i32_4 = arith.constant 1 : i32
    scf.for %arg13 = %c0_i32_2 to %2 step %c1_i32_4  : i32 {
      %c0_i32_36 = arith.constant 0 : i32
      %c0_i32_37 = arith.constant 0 : i32
      %c0_i32_38 = arith.constant 0 : i32
      %61 = tpu.memref_slice %arg2[%c0_i32_37, %c0_i32_38] : memref<64x256xf32, #tpu.memory_space<any>> -> memref<1x256xf32, #tpu.memory_space<any>>
      %c0_i32_39 = arith.constant 0 : i32
      %62 = tpu.memref_slice %arg11[%arg13, %c0_i32_39] : memref<16x256xf32, #tpu.memory_space<vmem>> -> memref<1x256xf32, #tpu.memory_space<vmem>>
      %63 = tpu.memref_slice %arg12[%c0_i32_36] : memref<1x!tpu.dma_semaphore, #tpu.memory_space<semaphore_mem>> -> memref<1x!tpu.dma_semaphore, #tpu.memory_space<semaphore_mem>>
      %64 = tpu.memref_squeeze %63 : memref<1x!tpu.dma_semaphore, #tpu.memory_space<semaphore_mem>> -> memref<!tpu.dma_semaphore, #tpu.memory_space<semaphore_mem>>
      tpu.wait_dma2 semaphore(%64 : memref<!tpu.dma_semaphore, #tpu.memory_space<semaphore_mem>>) src(%61 : memref<1x256xf32, #tpu.memory_space<any>>) dst(%62 : memref<1x256xf32, #tpu.memory_space<vmem>>)
    }
    %c16_i32_5 = arith.constant 16 : i32
    %c0 = arith.constant 0 : index
    %c0_6 = arith.constant 0 : index
    %3 = vector.load %arg11[%c0, %c0_6] : memref<16x256xf32, #tpu.memory_space<vmem>>, vector<16x256xf32>
    %4 = arith.truncf %3 : vector<16x256xf32> to vector<16x256xbf16>
    %c0_7 = arith.constant 0 : index
    %c0_8 = arith.constant 0 : index
    %5 = vector.load %arg3[%c0_7, %c0_8] : memref<256x256xbf16, #tpu.memory_space<vmem>>, vector<256x256xbf16>
    %cst = arith.constant dense<0.000000e+00> : vector<16x256xf32>
    %6 = tpu.matmul %4, %5, %cst {dimension_numbers = #tpu.dot_dimension_numbers<[1], [0], [0], [1], [0, 0, 1, 1], [], []>} : vector<16x256xbf16>, vector<256x256xbf16>, vector<16x256xf32> -> vector<16x256xf32>
    %c0_9 = arith.constant 0 : index
    %c0_10 = arith.constant 0 : index
    %7 = vector.load %arg4[%c0_9, %c0_10] : memref<1x256xf32, #tpu.memory_space<vmem>>, vector<1x256xf32>
    %8 = vector.broadcast %7 : vector<1x256xf32> to vector<16x256xf32>
    %9 = arith.addf %6, %8 : vector<16x256xf32>
    %cst_11 = arith.constant 0.000000e+00 : f32
    %10 = vector.broadcast %cst_11 : f32 to vector<16x256xf32>
    %11 = arith.maximumf %9, %10 : vector<16x256xf32>
    %12 = arith.truncf %11 : vector<16x256xf32> to vector<16x256xbf16>
    %c0_12 = arith.constant 0 : index
    %c0_13 = arith.constant 0 : index
    %13 = vector.load %arg5[%c0_12, %c0_13] : memref<256x128xbf16, #tpu.memory_space<vmem>>, vector<256x128xbf16>
    %cst_14 = arith.constant dense<0.000000e+00> : vector<16x128xf32>
    %14 = tpu.matmul %12, %13, %cst_14 {dimension_numbers = #tpu.dot_dimension_numbers<[1], [0], [0], [1], [0, 0, 1, 1], [], []>} : vector<16x256xbf16>, vector<256x128xbf16>, vector<16x128xf32> -> vector<16x128xf32>
    %c0_15 = arith.constant 0 : index
    %c0_16 = arith.constant 0 : index
    %15 = vector.load %arg6[%c0_15, %c0_16] : memref<1x128xf32, #tpu.memory_space<vmem>>, vector<1x128xf32>
    %16 = vector.broadcast %15 : vector<1x128xf32> to vector<16x128xf32>
    %17 = arith.addf %14, %16 : vector<16x128xf32>
    %18 = tpu.iota {dimensions = array<i32: 1>} : vector<16x128xi32>
    %c16_i32_17 = arith.constant 16 : i32
    %19 = vector.broadcast %c16_i32_17 : i32 to vector<16x128xi32>
    %20 = arith.cmpi slt, %18, %19 : vector<16x128xi32>
    %cst_18 = arith.constant -1.000000e+30 : f32
    %21 = vector.broadcast %cst_18 : f32 to vector<16x128xf32>
    %22 = arith.select %20, %17, %21 : vector<16x128xi1>, vector<16x128xf32>
    %cst_19 = arith.constant dense<0xFF800000> : vector<16xf32>
    %23 = vector.multi_reduction <maximumf>, %22, %cst_19 [1] : vector<16x128xf32> to vector<16xf32>
    %24 = vector.shape_cast %23 : vector<16xf32> to vector<16x1xf32>
    %25 = vector.broadcast %24 : vector<16x1xf32> to vector<16x128xf32>
    %26 = arith.subf %22, %25 : vector<16x128xf32>
    %27 = math.exp %26 : vector<16x128xf32>
    %cst_20 = arith.constant 0.000000e+00 : f32
    %28 = vector.broadcast %cst_20 : f32 to vector<16x128xf32>
    %29 = arith.select %20, %27, %28 : vector<16x128xi1>, vector<16x128xf32>
    %cst_21 = arith.constant dense<0.000000e+00> : vector<16xf32>
    %30 = vector.multi_reduction <add>, %29, %cst_21 [1] : vector<16x128xf32> to vector<16xf32>
    %31 = vector.shape_cast %30 : vector<16xf32> to vector<16x1xf32>
    %32 = math.log %31 : vector<16x1xf32>
    %33 = arith.addf %24, %32 : vector<16x1xf32>
    %34 = vector.broadcast %33 : vector<16x1xf32> to vector<16x128xf32>
    %35 = arith.subf %22, %34 : vector<16x128xf32>
    %36 = arith.truncf %35 : vector<16x128xf32> to vector<16x128xbf16>
    %c0_22 = arith.constant 0 : index
    %c0_23 = arith.constant 0 : index
    %37 = vector.load %arg8[%c0_22, %c0_23] : memref<16x128xbf16, #tpu.memory_space<vmem>>, vector<16x128xbf16>
    tpu.vector_store %arg8[%c0_22, %c0_23], %36 {strides = array<i32>} : memref<16x128xbf16, #tpu.memory_space<vmem>>, vector<16x128xbf16>,
    %38 = arith.sitofp %18 : vector<16x128xi32> to vector<16x128xf32>
    %39 = vector.broadcast %24 : vector<16x1xf32> to vector<16x128xf32>
    %40 = arith.cmpf oeq, %22, %39 : vector<16x128xf32>
    %cst_24 = arith.constant 1.280000e+02 : f32
    %41 = vector.broadcast %cst_24 : f32 to vector<16x128xf32>
    %42 = arith.select %40, %38, %41 : vector<16x128xi1>, vector<16x128xf32>
    %cst_25 = arith.constant dense<0x7F800000> : vector<16xf32>
    %43 = vector.multi_reduction <minimumf>, %42, %cst_25 [1] : vector<16x128xf32> to vector<16xf32>
    %44 = vector.shape_cast %43 : vector<16xf32> to vector<16x1xf32>
    %45 = arith.fptosi %44 : vector<16x1xf32> to vector<16x1xi32>
    %c0_26 = arith.constant 0 : index
    %c0_27 = arith.constant 0 : index
    %46 = vector.load %arg9[%c0_26, %c0_27] : memref<16x1xi32, #tpu.memory_space<vmem>>, vector<16x1xi32>
    tpu.vector_store %arg9[%c0_26, %c0_27], %45 {strides = array<i32>} : memref<16x1xi32, #tpu.memory_space<vmem>>, vector<16x1xi32>,
    %c0_28 = arith.constant 0 : index
    %c0_29 = arith.constant 0 : index
    %47 = vector.load %arg7[%c0_28, %c0_29] : memref<16x1xi32, #tpu.memory_space<vmem>>, vector<16x1xi32>
    %48 = vector.broadcast %47 : vector<16x1xi32> to vector<16x128xi32>
    %49 = arith.cmpi eq, %18, %48 : vector<16x128xi32>
    %cst_30 = arith.constant 0.000000e+00 : f32
    %50 = vector.broadcast %cst_30 : f32 to vector<16x128xf32>
    %51 = arith.select %49, %35, %50 : vector<16x128xi1>, vector<16x128xf32>
    %52 = vector.shape_cast %51 : vector<16x128xf32> to vector<1x16x128xf32>
    %cst_31 = arith.constant dense<0.000000e+00> : vector<1xf32>
    %53 = vector.multi_reduction <add>, %52, %cst_31 [1, 2] : vector<1x16x128xf32> to vector<1xf32>
    %54 = vector.shape_cast %53 : vector<1xf32> to vector<1x1x1xf32>
    %55 = vector.extract %54[0, 0, 0] : f32 from vector<1x1x1xf32>
    %cst_32 = arith.constant 0.000000e+00 : f32
    %56 = arith.subf %cst_32, %55 : f32
    %cst_33 = arith.constant 0.000000e+00 : f32
    %57 = vector.broadcast %cst_33 : f32 to vector<8x128xf32>
    %58 = vector.broadcast %56 : f32 to vector<8x128xf32>
    %59 = arith.addf %58, %57 : vector<8x128xf32>
    %c0_34 = arith.constant 0 : index
    %c0_35 = arith.constant 0 : index
    %60 = vector.load %arg10[%c0_34, %c0_35] : memref<8x128xf32, #tpu.memory_space<vmem>>, vector<8x128xf32>
    tpu.vector_store %arg10[%c0_34, %c0_35], %59 {strides = array<i32>} : memref<8x128xf32, #tpu.memory_space<vmem>>, vector<8x128xf32>,
    return
  }
  func.func @transform_1(%arg0: i32, %arg1: memref<32xi32, #tpu.memory_space<smem>>) -> (i32, i32) {
    %c0_i32 = arith.constant 0 : i32
    %c0_i32_0 = arith.constant 0 : i32
    %c0_i32_1 = arith.constant 0 : i32
    return %c0_i32, %c0_i32_0 : i32, i32
  }
  func.func @transform_2(%arg0: i32, %arg1: memref<32xi32, #tpu.memory_space<smem>>) -> (i32, i32) {
    %c0_i32 = arith.constant 0 : i32
    %c0_i32_0 = arith.constant 0 : i32
    %c0_i32_1 = arith.constant 0 : i32
    return %c0_i32, %c0_i32_0 : i32, i32
  }
  func.func @transform_3(%arg0: i32, %arg1: memref<32xi32, #tpu.memory_space<smem>>) -> (i32, i32) {
    %c0_i32 = arith.constant 0 : i32
    %c0_i32_0 = arith.constant 0 : i32
    %c0_i32_1 = arith.constant 0 : i32
    return %c0_i32, %c0_i32_0 : i32, i32
  }
  func.func @transform_4(%arg0: i32, %arg1: memref<32xi32, #tpu.memory_space<smem>>) -> (i32, i32) {
    %c0_i32 = arith.constant 0 : i32
    %c0_i32_0 = arith.constant 0 : i32
    %c0_i32_1 = arith.constant 0 : i32
    return %c0_i32, %c0_i32_0 : i32, i32
  }
  func.func @transform_5(%arg0: i32, %arg1: memref<32xi32, #tpu.memory_space<smem>>) -> (i32, i32) {
    %c0_i32 = arith.constant 0 : i32
    %c0_i32_0 = arith.constant 0 : i32
    return %arg0, %c0_i32 : i32, i32
  }
  func.func @transform_6(%arg0: i32, %arg1: memref<32xi32, #tpu.memory_space<smem>>) -> (i32, i32) {
    %c0_i32 = arith.constant 0 : i32
    %c0_i32_0 = arith.constant 0 : i32
    return %arg0, %c0_i32 : i32, i32
  }
  func.func @transform_7(%arg0: i32, %arg1: memref<32xi32, #tpu.memory_space<smem>>) -> (i32, i32) {
    %c0_i32 = arith.constant 0 : i32
    %c0_i32_0 = arith.constant 0 : i32
    return %arg0, %c0_i32 : i32, i32
  }
  func.func @transform_8(%arg0: i32, %arg1: memref<32xi32, #tpu.memory_space<smem>>) -> (i32, i32) {
    %c0_i32 = arith.constant 0 : i32
    %c0_i32_0 = arith.constant 0 : i32
    return %arg0, %c0_i32 : i32, i32
  }
}

</mosaic_0001>

<bundles_post_ra>
// kernel: tpu_custom_call.1
= control target key start
LH: loop header
LB: loop body
LE: loop exit
PB: predicated region body
PF: predicated region fallthrough
CT: control target
= control target key end

     0   :  { %s1696_s12 = smov [#allocation5]   ;;  %s1965_s0 = inlined_call_operand.vmem [shape: s32[32], index: 0, kind: input, shape index: {}]   ;;  %s1966_s1 = inlined_call_operand.hbm [shape: f32[64,256], index: 1, kind: input, shape index: {}]   ;;  %s1967_s2 = inlined_call_operand.hbm [shape: bf16[256,256], index: 2, kind: input, shape index: {}]   ;;  %s1968_s3 = inlined_call_operand.vmem [shape: f32[1,256], index: 3, kind: input, shape index: {}]   ;;  %s1969_s4 = inlined_call_operand.hbm [shape: bf16[256,128], index: 4, kind: input, shape index: {}]   ;;  %s1970_s5 = inlined_call_operand.vmem [shape: f32[1,128], index: 5, kind: input, shape index: {}]   ;;  %s1971_s6 = inlined_call_operand.vmem [shape: s32[32,1], index: 6, kind: input, shape index: {}]   ;;  %s1972_s7 = inlined_call_operand.hbm [shape: bf16[32,128], index: 7, kind: output, shape index: {0}]   ;;  %s1973_s8 = inlined_call_operand.vmem [shape: s32[32,1], index: 8, kind: output, shape index: {1}]   ;;  %s1974_s9 = inlined_call_operand.hbm [shape: f32[16,128], index: 9, kind: output, shape index: {2}]  }
   0x1   :  { %1981 = sst [smem:[#allocation27_spill]] %s1967_s2  ;;  %s16_s11 = sshll.u32 %s1965_s0, 4  ;;  %s17_s11 = int_to_ptr.vmem [resolvable:$true] %s16_s11 }
   0x2   :  { %1982 = sst [smem:[#allocation28_spill]] %s1969_s4 }
   0x3   :  { %1983 = sst [smem:[#allocation29_spill]] %s1971_s6 }
   0x4   :  { %1984 = sst [smem:[#allocation30_spill]] %s1973_s8 }
   0x5   :  { %19 = dma.vmem_to_smem %s17_s11, 16, %s1696_s12, [#allocation4] }
   0x6   :  { %1652 = dma.done.wait [#allocation4], 16 }
   0x7   :  { %1653 = vsyncadd [#allocation4], 4294967280 }
   0x8   :  { %22 = sfence }
   0x9   :  { %23 = vsyncpa [#allocation7], 0 }
   0xa   :  { %24 = vsyncpa [#allocation10], 0 }
   0xb   :  { %25 = vsyncpa [#allocation8], 0 }
   0xc   :  { %27 = vsyncpa [#allocation8 + $0x1], 0 }
   0xd   :  { %28 = vsyncpa [#allocation13], 0 }
   0xe   :  { %30 = vsyncpa [#allocation13 + $0x1], 0  ;;  %s1762_s13 = smov 0   ;;  %s1764_s14 = smov 0  }
   0xf   :  { %s1766_s15 = smov 0   ;;  %s1768_s16 = smov 0  }
  0x10 LB: > { %1985 = sst [smem:[#allocation21_spill]] %s1674_s13  ;;  %s1783_s0 = sadd.s32 4294967295, %s1686_s16   ;;  %s1686_s16 = sphi %s1768_s16, %s2000_s16   ;;  %s1682_s15 = sphi %s1766_s15, %s2003_s15   ;;  %s1678_s14 = sphi %s1764_s14, %s2002_s14   ;;  %s1674_s13 = sphi %s1762_s13, %s2001_s13  }
  0x11   : > { %1986 = sst [smem:[#allocation22_spill]] %s1678_s14  ;;  %s1091_s17 = sadd.s32 4294967294, %s1686_s16  }
  0x12   : > { %1987 = sst [smem:[#allocation23_spill]] %s1682_s15  ;;  %s1787_s18 = sadd.s32 1, %s1686_s16  }
  0x13   : > { %1988 = sst [smem:[#allocation24_spill]] %s1787_s18  ;;  %s153_s19 = sadd.s32 1, %s1682_s15 }
  0x14   : > { %s150_s20 = ssub.s32 %s1686_s16, %s1787_s18  ;;  %p163_p0 = scmp.ne.s32.totalorder %s1682_s15, %s1678_s14 }
  0x15   : > { %p151_p1 = scmp.eq.s32.totalorder %s150_s20, 0  ;;  %p164_p2 = scmp.eq.s32.totalorder %s1783_s0, 1 }
  0x16   : > { %p169_p3 = scmp.ne.s32.totalorder %s1678_s14, %s1674_s13  ;;  %p170_p4 = scmp.eq.s32.totalorder %s1091_s17, 1 }
  0x17   : > { %s1798_s21 = scalar_select %p151_p1, %s1682_s15, %s153_s19  }
  0x18   : > { %p1800_p5 = por %p164_p2, %p163_p0  ;;  %p1804_p6 = por %p170_p4, %p169_p3 }
  0x19   : > { %1989 = sst [smem:[#allocation25_spill]] %s1798_s21  ;;  %p1092_p7 = scmp.ge.s32.totalorder %s1686_s16, 1 }
  0x1a   : > { %s1991_s23 = scalar_select %p1804_p6, 1, 0 }
  0x1b   : > { %p229_p8 = scmp.lt.s32.totalorder %s1686_s16, 3  ;;  %p1400_p9 = scmp.eq.s32.totalorder %s1783_s0, 0 }
  0x1c   : > { %1992 = sst [smem:[#allocation26_spill]] %s1991_s23  ;;  %s1697_s28 = smov [#allocation6]  }
  0x1d   : > { %p1811_p10 = pnand %p1092_p7, %p229_p8  ;;  %s1994_s2 = sld [smem:[#allocation27_spill]] }
  0x1e   : > { %s242_s29 = sshll.u32 %s1697_s28, 4  ;;  %s1995_s4 = sld [smem:[#allocation28_spill]]  ;;  %s243_s29 = int_to_ptr.vmem [resolvable:$true] %s242_s29 }
  0x1f   : > { %p1386_p11 = pneg %p1811_p10  ;;  %s1698_s12 = smov 128  }
  0x20   : > { %s1699_s17 = smov 8   ;;  %s1700_s19 = smov [#allocation9]  }
  0x21   : > { %p1387_p12 = pnand %p1400_p9, %p1386_p11  ;;  %s259_s20 = sshll.u32 %s1700_s19, 4  ;;  %s260_s20 = int_to_ptr.vmem [resolvable:$true] %s259_s20 }
  0x22   : > { %s1701_s25 = smov 64   ;;  %s1702_s26 = smov 4  }
  0x23   : > { %s240_s27 = sshll.u32 %s1994_s2, 4  ;;  %287 = sbr.rel (%p1811_p10) target bundleno = 862 (0x35e), region = 40  ;;  %s241_s27 = int_to_ptr.hbm [resolvable:$true] %s240_s27 }
  0x24   : > { %s257_s11 = sshll.u32 %s1995_s4, 4  ;;  %s258_s11 = int_to_ptr.hbm [resolvable:$true] %s257_s11 }
  0x25   : > { %1389 = dma.hbm_to_vmem [thread:$0]  (!%p1387_p12), %s241_s27, 4096, %s243_s29, [#allocation7], %s1698_s12, %s1698_s12, %s1699_s17  }
  0x26   : > { %1392 = dma.hbm_to_vmem [thread:$0]  (!%p1387_p12), %s258_s11, 2048, %s260_s20, [#allocation10], %s1701_s25, %s1701_s25, %s1702_s26  }
  0x28   : > { %1655 = dma.done.wait (%p1400_p9), [#allocation7], 4096  }
  0x29   : > { %1657 = vsyncadd (%p1400_p9), [#allocation7], 4294963200 }
  0x2a   : > { %1659 = dma.done.wait (%p1400_p9), [#allocation10], 2048  }
  0x2b   : > { %1661 = vsyncadd (%p1400_p9), [#allocation10], 4294965248  ;;  %s1836_s27 = sand.u32 1, %s1678_s14   ;;  %s1101_s24 = sshll.u32 %s1783_s0, 1 }
  0x2c   : > { %s1099_s28 = sshll.u32 %s1836_s27, 3  ;;  %p336_p13 = scmp.lt.s32.totalorder %s1101_s24, 3 }
  0x2d   : > { %s1105_s29 = sshll.u32 %s1783_s0, 4  ;;  %s1996_s6 = sld [smem:[#allocation29_spill]] }
  0x2e   : > { %s2005_s24 = smov (!%p336_p13, %s1101_s24), 3  ;;  %s1997_s8 = sld [smem:[#allocation30_spill]] }
  0x2f   : > { %s1102_s30 = sshll.u32 %s2005_s24, 3  ;;  %s1851_s25 = scalar_lea.vmem [#allocation11], %s1099_s28 }
  0x30   : > { %s1853_s26 = scalar_lea.vmem [#allocation12], %s1099_s28  ;;  %s1855_s2 = smov 0  }
  0x33   : > { %s1844_s12 = scalar_lea.vmem %s1996_s6, %s1102_s30 }
  0x34   : > { %s1849_s20 = scalar_lea.vmem %s1997_s8, %s1102_s30 }
  0x35 LB: >> { %s355_s24 = sadd.s32 %s1690_s2, %s1105_s29  ;;  %s362_s10 = sshrl.u32 %s1690_s2, 3  ;;  %s1690_s2 = sphi %s1855_s2, %s354_s2  }
  0x36   : >> { %s356_s30 = sld [smem:[#allocation5 + %s355_s24]]  ;;  %s363_s11 = sand.u32 7, %s1690_s2  }
  0x37   : >> { %s1107_s17 = sshll.u32 %s362_s10, 4 }
  0x38   : >> { %s365_s19 = sadd.s32 %s1107_s17, %s363_s11 }
  0x39   : >> { %s366_s28 = scalar_lea.vmem [#allocation2], %s365_s19  ;;  %s1552_s19 = scalar_lea.hbm %s1966_s1, 128 }
  0x3a   : >> { %s1865_s4 = sshll.u32 %s366_s28, 4  ;;  %s370_s4 = int_to_ptr.vmem [resolvable:$true] %s1865_s4 }
  0x3c   : >> { %s357_s6 = sshrl.u32 %s356_s30, 3  ;;  %s358_s8 = sand.u32 7, %s356_s30  }
  0x3d   : >> { %s1106_s21 = sshll.u32 %s357_s6, 4 }
  0x3e   : >> { %s360_s15 = sadd.s32 %s1106_s21, %s358_s8 }
  0x3f   : >> { %s361_s23 = scalar_lea.hbm %s1966_s1, %s360_s15 }
  0x40   : >> { %s1871_s13 = sshll.u32 %s361_s23, 4  ;;  %s368_s13 = int_to_ptr.hbm [resolvable:$true] %s1871_s13 }
  0x41   : >> { %s1548_s24 = sshra.s32 %s368_s13, 4  ;;  %s1549_s24 = int_to_ptr.hbm [resolvable:$true] %s1548_s24 }
  0x42   : >> { %s1550_s10 = scalar_lea.hbm %s1549_s24, 2  ;;  %p1553_p1 = scmp.lt.s32.totalorder %s1549_s24, %s1966_s1 }
  0x43   : >> { %p1551_p0 = scmp.ne.s32.totalorder %s1549_s24, %s1550_s10  ;;  %p1554_p2 = scmp.lt.s32.totalorder %s1552_s19, %s1550_s10 }
  0x45   : >> { %p1555_p3 = por %p1554_p2, %p1553_p1 }
  0x47   : >> { %p1556_p4 = pnand %p1555_p3, %p1551_p0 }
  0x49   : >> { %1559 = shalt.err (!%p1556_p4)  }
  0x4a   : >> { %s1560_s8 = sshra.s32 %s370_s4, 4  ;;  %s1703_s15 = smov [#allocation2]   ;;  %s1561_s8 = int_to_ptr.vmem [resolvable:$true] %s1560_s8 }
  0x4b   : >> { %s1562_s14 = scalar_lea.vmem %s1561_s8, 2  ;;  %s1564_s18 = scalar_lea.vmem %s1703_s15, 32 }
  0x4c   : >> { %p1563_p7 = scmp.ne.s32.totalorder %s1561_s8, %s1562_s14  ;;  %p1565_p8 = scmp.lt.s32.totalorder %s1561_s8, [#allocation2] }
  0x4d   : >> { %p1566_p9 = scmp.lt.s32.totalorder %s1564_s18, %s1562_s14 }
  0x4f   : >> { %p1567_p10 = por %p1566_p9, %p1565_p8 }
  0x51   : >> { %p1568_p11 = pnand %p1567_p10, %p1563_p7 }
  0x53   : >> { %1571 = shalt.err (!%p1568_p11)  }
  0x54   : >> { %s1704_s21 = smov 128   ;;  %s1705_s23 = smov 1  }
  0x55   : >> { %374 = dma.hbm_to_vmem [thread:$0]  %s368_s13, 32, %s370_s4, [#allocation3], %s1704_s21, %s1704_s21, %s1705_s23 }
  0x56   : >> { %s354_s2 = sadd.s32 1, %s1690_s2  }
  0x57   : >> { %p351_p12 = scmp.ge.s32.totalorder %s354_s2, 16  }
  0x58   : > { %s1692_s28 = smov (%p351_p12), 0  }
  0x59   : > { %353 = sbr.rel (!%p351_p12) target bundleno = 53 (0x35), region = 129 }
  0x5e LB: >> { %1662 = dma.done.wait [#allocation3], 32  ;;  %s1694_s28 = sphi %s1692_s28, %s380_s28  }
  0x5f   : >> { %1663 = vsyncadd [#allocation3], 4294967264  ;;  %s380_s28 = sadd.s32 1, %s1694_s28  }
  0x60   : >> { %p377_p13 = scmp.ge.s32.totalorder %s380_s28, 16  }
  0x61   : > { %v1166_v0 = vld [vmem:[#allocation6 + $0x70] sm:$0xf] (%p377_p13)  ;;  %v1323_v1 = vld [vmem:[#allocation6 + $0x74] sm:$0xf0] (%p377_p13)  ;;  %v1322_v5 = vld [vmem:[#allocation6 + $0x74] sm:$0xf] (%p377_p13) }
  0x62   : > { %379 = sbr.rel (!%p377_p13) target bundleno = 94 (0x5e), region = 140  ;;  %v1230_v2 = vld [vmem:[#allocation6 + $0xf0] sm:$0xf] (%p377_p13)  ;;  %v1167_v3 = vor.u32 (%p377_p13), %v1323_v1, %v1166_v0  ;;  %v1339_v4 = vld [vmem:[#allocation6 + $0xf4] sm:$0xf0] (%p377_p13)  ;;  %vm854_vm6 = vcmask (%p377_p13), 7168  }
  0x63   : > { %v1168_v6 = vld [vmem:[#allocation6 + $0x78] sm:$0xf0] (%p377_p13)  ;;  %v1231_v7 = vor.u32 (%p377_p13), %v1339_v4, %v1230_v2  ;;  %v1338_v9 = vld [vmem:[#allocation6 + $0xf4] sm:$0xf] (%p377_p13)  ;;  %v1158_v11 = vld [vmem:[#allocation6 + $0x60] sm:$0xf] (%p377_p13) }
  0x64   : > { %v1171_v8 = vor.u32 (%p377_p13), %v1322_v5, %v1168_v6  ;;  %v1232_v10 = vld [vmem:[#allocation6 + $0xf8] sm:$0xf0] (%p377_p13)  ;;  %588 = vmatpush.bf16.msra.mxu0 (%p377_p13), %v1167_v3  ;;  %v1321_v13 = vld [vmem:[#allocation6 + $0x64] sm:$0xf0] (%p377_p13)  ;;  %v1222_v14 = vld [vmem:[#allocation6 + $0xe0] sm:$0xf] (%p377_p13) }
  0x65   : > { %v1235_v12 = vor.u32 (%p377_p13), %v1338_v9, %v1232_v10  ;;  %v1337_v15 = vld [vmem:[#allocation6 + $0xe4] sm:$0xf0] (%p377_p13)  ;;  %602 = vmatpush.bf16.msra.mxu1 (%p377_p13), %v1231_v7  ;;  %v1159_v16 = vor.u32 (%p377_p13), %v1321_v13, %v1158_v11  ;;  %v1320_v18 = vld [vmem:[#allocation6 + $0x64] sm:$0xf] (%p377_p13)  ;;  %v1160_v19 = vld [vmem:[#allocation6 + $0x68] sm:$0xf0] (%p377_p13) }
  0x66   : > { %616 = vmatpush.bf16.msra.mxu2 (%p377_p13), %v1171_v8  ;;  %v1223_v17 = vor.u32 (%p377_p13), %v1337_v15, %v1222_v14  ;;  %v1336_v20 = vld [vmem:[#allocation6 + $0xe4] sm:$0xf] (%p377_p13)  ;;  %v1163_v21 = vor.u32 (%p377_p13), %v1320_v18, %v1160_v19  ;;  %v1224_v22 = vld [vmem:[#allocation6 + $0xe8] sm:$0xf0] (%p377_p13)  ;;  %v1150_v23 = vld [vmem:[#allocation6 + $0x50] sm:$0xf] (%p377_p13) }
  0x67   : > { %630 = vmatpush.bf16.msra.mxu3 %v1235_v12  ;;  %v1319_v24 = vld [vmem:[#allocation6 + $0x54] sm:$0xf0]  ;;  %v1227_v25 = vor.u32 %v1336_v20, %v1224_v22  ;;  %v1214_v26 = vld [vmem:[#allocation6 + $0xd0] sm:$0xf]  ;;  %v1318_v28 = vld [vmem:[#allocation6 + $0x54] sm:$0xf] }
  0x68   : > { %v1335_v27 = vld [vmem:[#allocation6 + $0xd4] sm:$0xf0]  ;;  %589 = vmatpush.bf16.msra.mxu0 %v1159_v16  ;;  %v1151_v29 = vor.u32 %v1319_v24, %v1150_v23  ;;  %v1152_v30 = vld [vmem:[#allocation6 + $0x58] sm:$0xf0]  ;;  %v1334_v31 = vld [vmem:[#allocation6 + $0xd4] sm:$0xf] }
  0x69   : > { %v1216_v32 = vld [vmem:[#allocation6 + $0xd8] sm:$0xf0]  ;;  %603 = vmatpush.bf16.msra.mxu1 %v1223_v17  ;;  %v1215_v33 = vor.u32 %v1335_v27, %v1214_v26  ;;  %v1155_v34 = vor.u32 %v1318_v28, %v1152_v30  ;;  %v1142_v35 = vld [vmem:[#allocation6 + $0x40] sm:$0xf]  ;;  %v1317_v36 = vld [vmem:[#allocation6 + $0x44] sm:$0xf0] }
  0x6a   : > { %617 = vmatpush.bf16.msra.mxu2 %v1163_v21  ;;  %v1206_v37 = vld [vmem:[#allocation6 + $0xc0] sm:$0xf]  ;;  %v1219_v38 = vor.u32 %v1334_v31, %v1216_v32  ;;  %v1333_v39 = vld [vmem:[#allocation6 + $0xc4] sm:$0xf0]  ;;  %v1316_v40 = vld [vmem:[#allocation6 + $0x44] sm:$0xf]  ;;  %v1143_v44 = vor.u32 %v1317_v36, %v1142_v35 }
  0x6b   : > { %631 = vmatpush.bf16.msra.mxu3 %v1227_v25  ;;  %v1144_v41 = vld [vmem:[#allocation6 + $0x48] sm:$0xf0]  ;;  %v1332_v42 = vld [vmem:[#allocation6 + $0xc4] sm:$0xf]  ;;  %v1207_v45 = vor.u32 %v1333_v39, %v1206_v37  ;;  %v1134_v47 = vld [vmem:[#allocation6 + $0x30] sm:$0xf] }
  0x6c   : > { %v1208_v43 = vld [vmem:[#allocation6 + $0xc8] sm:$0xf0]  ;;  %590 = vmatpush.bf16.msra.mxu0 %v1151_v29  ;;  %v1147_v46 = vor.u32 %v1316_v40, %v1144_v41  ;;  %v1315_v48 = vld [vmem:[#allocation6 + $0x34] sm:$0xf0]  ;;  %v1198_v49 = vld [vmem:[#allocation6 + $0xb0] sm:$0xf] }
  0x6d   : > { %604 = vmatpush.bf16.msra.mxu1 %v1215_v33  ;;  %v1211_v50 = vor.u32 %v1332_v42, %v1208_v43  ;;  %v1331_v51 = vld [vmem:[#allocation6 + $0xb4] sm:$0xf0]  ;;  %v1314_v52 = vld [vmem:[#allocation6 + $0x34] sm:$0xf]  ;;  %v1136_v53 = vld [vmem:[#allocation6 + $0x38] sm:$0xf0]  ;;  %v1135_v56 = vor.u32 %v1315_v48, %v1134_v47 }
  0x6e   : > { %618 = vmatpush.bf16.msra.mxu2 %v1155_v34  ;;  %v1330_v54 = vld [vmem:[#allocation6 + $0xb4] sm:$0xf]  ;;  %v1200_v55 = vld [vmem:[#allocation6 + $0xb8] sm:$0xf0]  ;;  %v1199_v57 = vor.u32 %v1331_v51, %v1198_v49  ;;  %v1139_v58 = vor.u32 %v1314_v52, %v1136_v53  ;;  %v1126_v59 = vld [vmem:[#allocation6 + $0x20] sm:$0xf] }
  0x6f   : > { %632 = vmatpush.bf16.msra.mxu3 %v1219_v38  ;;  %v1313_v60 = vld [vmem:[#allocation6 + $0x24] sm:$0xf0]  ;;  %v1190_v61 = vld [vmem:[#allocation6 + $0xa0] sm:$0xf]  ;;  %v1203_v62 = vor.u32 %v1330_v54, %v1200_v55  ;;  %v1312_v0 = vld [vmem:[#allocation6 + $0x24] sm:$0xf] }
  0x70   : > { %591 = vmatpush.bf16.msra.mxu0 %v1143_v44  ;;  %v1329_v63 = vld [vmem:[#allocation6 + $0xa4] sm:$0xf0]  ;;  %v1128_v1 = vld [vmem:[#allocation6 + $0x28] sm:$0xf0]  ;;  %v1328_v2 = vld [vmem:[#allocation6 + $0xa4] sm:$0xf]  ;;  %v1127_v4 = vor.u32 %v1313_v60, %v1126_v59 }
  0x71   : > { %605 = vmatpush.bf16.msra.mxu1 %v1207_v45  ;;  %v1192_v3 = vld [vmem:[#allocation6 + $0xa8] sm:$0xf0]  ;;  %v1191_v5 = vor.u32 %v1329_v63, %v1190_v61  ;;  %v1131_v6 = vor.u32 %v1312_v0, %v1128_v1  ;;  %v1118_v7 = vld [vmem:[#allocation6 + $0x10] sm:$0xf]  ;;  %v1311_v8 = vld [vmem:[#allocation6 + $0x14] sm:$0xf0] }
  0x72   : > { %619 = vmatpush.bf16.msra.mxu2 %v1147_v46  ;;  %v1182_v9 = vld [vmem:[#allocation6 + $0x90] sm:$0xf]  ;;  %v1195_v10 = vor.u32 %v1328_v2, %v1192_v3  ;;  %v1327_v11 = vld [vmem:[#allocation6 + $0x94] sm:$0xf0]  ;;  %v1310_v12 = vld [vmem:[#allocation6 + $0x14] sm:$0xf]  ;;  %v1119_v16 = vor.u32 %v1311_v8, %v1118_v7 }
  0x73   : > { %633 = vmatpush.bf16.msra.mxu3 %v1211_v50  ;;  %v1120_v13 = vld [vmem:[#allocation6 + $0x18] sm:$0xf0]  ;;  %v1326_v14 = vld [vmem:[#allocation6 + $0x94] sm:$0xf]  ;;  %v1110_v17 = vld [vmem:[#allocation6] sm:$0xf]  ;;  %v1183_v18 = vor.u32 %v1327_v11, %v1182_v9 }
  0x74   : > { %592 = vmatpush.bf16.msra.mxu0 %v1135_v56  ;;  %v1184_v15 = vld [vmem:[#allocation6 + $0x98] sm:$0xf0]  ;;  %v1123_v19 = vor.u32 %v1310_v12, %v1120_v13  ;;  %v1309_v20 = vld [vmem:[#allocation6 + $0x4] sm:$0xf0]  ;;  %v1174_v21 = vld [vmem:[#allocation6 + $0x80] sm:$0xf] }
  0x75   : > { %606 = vmatpush.bf16.msra.mxu1 %v1199_v57  ;;  %v1325_v22 = vld [vmem:[#allocation6 + $0x84] sm:$0xf0]  ;;  %v1187_v23 = vor.u32 %v1326_v14, %v1184_v15  ;;  %v1308_v24 = vld [vmem:[#allocation6 + $0x4] sm:$0xf]  ;;  %v1112_v25 = vld [vmem:[#allocation6 + $0x8] sm:$0xf0]  ;;  %v1111_v28 = vor.u32 %v1309_v20, %v1110_v17 }
  0x76   : > { %620 = vmatpush.bf16.msra.mxu2 %v1139_v58  ;;  %v1324_v26 = vld [vmem:[#allocation6 + $0x84] sm:$0xf]  ;;  %v1176_v27 = vld [vmem:[#allocation6 + $0x88] sm:$0xf0]  ;;  %v386_v30 = vld [vmem:[#allocation2 + $0x10] sm:$0xff]  ;;  %v1175_v31 = vor.u32 %v1325_v22, %v1174_v21  ;;  %v1115_v32 = vor.u32 %v1308_v24, %v1112_v25  ;;  %s906_s17 = sshll.u32 %s1851_s25, 4  ;;  %s907_s17 = int_to_ptr.vmem [resolvable:$true] %s906_s17 }
  0x77   : > { %634 = vmatpush.bf16.msra.mxu3 %v1203_v62  ;;  %v384_v29 = vld [vmem:[#allocation2] sm:$0xff]  ;;  %v385_v33 = vld [vmem:[#allocation2 + $0x8] sm:$0xff]  ;;  %v387_v34 = vld [vmem:[#allocation2 + $0x18] sm:$0xff]  ;;  %v1179_v35 = vor.u32 %v1324_v26, %v1176_v27  ;;  %s884_s30 = scalar_lea.sflag [#allocation8], %s1836_s27  ;;  %s1592_s15 = scalar_lea.hbm %s1972_s7, 16 }
  0x78   : > { %593 = vmatpush.bf16.msra.mxu0 %v1127_v4  ;;  %v1347_v36 = vld [vmem:[#allocation9 + $0x38] sm:$0xff]  ;;  %v388_v37 = vpack.c.bf16 %v386_v30, %v384_v29  ;;  %v389_v39 = vpack.c.bf16 %v387_v34, %v385_v33  ;;  %v1346_v40 = vld [vmem:[#allocation9 + $0x30] sm:$0xff]  ;;  %v1345_v42 = vld [vmem:[#allocation9 + $0x28] sm:$0xff] }
  0x79   : > { %607 = vmatpush.bf16.msra.mxu1 %v1191_v5  ;;  %v1355_v38 = vld [vmem:[#allocation9 + $0x78] sm:$0xff]  ;;  %v1354_v41 = vld [vmem:[#allocation9 + $0x70] sm:$0xff]  ;;  %v1344_v43 = vld [vmem:[#allocation9 + $0x20] sm:$0xff] }
  0x7a   : > { %621 = vmatpush.bf16.msra.mxu2 %v1131_v6  ;;  %v1353_v44 = vld [vmem:[#allocation9 + $0x68] sm:$0xff]  ;;  %v1343_v45 = vld [vmem:[#allocation9 + $0x18] sm:$0xff]  ;;  %v1352_v46 = vld [vmem:[#allocation9 + $0x60] sm:$0xff] }
  0x7b   : > { %635 = vmatpush.bf16.msra.mxu3 %v1195_v10  ;;  %v1342_v47 = vld [vmem:[#allocation9 + $0x10] sm:$0xff]  ;;  %v1351_v48 = vld [vmem:[#allocation9 + $0x58] sm:$0xff]  ;;  %v1341_v49 = vld [vmem:[#allocation9 + $0x8] sm:$0xff] }
  0x7c   : > { %594 = vmatpush.bf16.msra.mxu0 %v1119_v16  ;;  %v1350_v50 = vld [vmem:[#allocation9 + $0x50] sm:$0xff]  ;;  %v1340_v51 = vld [vmem:[#allocation9] sm:$0xff]  ;;  %v1349_v52 = vld [vmem:[#allocation9 + $0x48] sm:$0xff]  ;;  %v1706_v16 = vmov 0  }
  0x7d   : > { %608 = vmatpush.bf16.msra.mxu1 %v1183_v18  ;;  %v1348_v53 = vld [vmem:[#allocation9 + $0x40] sm:$0xff]  ;;  %1465 = vset.pattern.permute.xlu2 %v1706_v16  ;;  %v858_v17 = vld [vmem:[%s1844_s12 + $0x8] sm:$0xff]  ;;  %v810_v18 = vlaneseq }
  0x7e   : > { %622 = vmatpush.bf16.msra.mxu2 %v1123_v19  ;;  %v422_v54 = vld [vmem:[%s1968_s3] sm:$0x3]  ;;  %1466 = vset.pattern.permute.xlu0 %v1706_v16 }
  0x7f   : > { %636 = vmatpush.bf16.msra.mxu3 %v1187_v23  ;;  %v424_v56 = vperm.slane %v422_v54, 0  ;;  %v425_v60 = vperm.slane %v422_v54, 1  ;;  %v857_v15 = vld [vmem:[%s1844_s12] sm:$0xff]  ;;  %v1895_v21 = vand.u32 127, %v810_v18  ;;  %s1356_s12 = sshll.u32 %s1783_s0, 3 }
  0x80   : > { %595 = vmatpush.bf16.msra.mxu0 %v1111_v28  ;;  %860 = vperm.xlu2 %1465, %v857_v15   ;;  %v1467_v20 = vld [vmem:[%s1970_s5] ss:$0 sm:$0xff]  ;;  %s905_s11 = scalar_lea.hbm %s1972_s7, %s1356_s12 }
  0x81   : > { %609 = vmatpush.bf16.msra.mxu1 %v1175_v31  ;;  %vm812_vm0 = vcmp.lt.s32.totalorder %v1895_v21, 16  ;;  %s908_s19 = sshll.u32 %s905_s11, 4  ;;  %s909_s19 = int_to_ptr.hbm [resolvable:$true] %s908_s19 }
  0x82   : > { %623 = vmatpush.bf16.msra.mxu2 %v1115_v32  ;;  %s1586_s6 = sshra.s32 %s909_s19, 4  ;;  %s1587_s6 = int_to_ptr.hbm [resolvable:$true] %s1586_s6 }
  0x83   : > { %637 = vmatpush.bf16.msra.mxu3 %v1179_v35  ;;  %596 = vmatmul.bf16.vlgmr.msra.gmra.mxu0 %v388_v37  ;;  %v843_v35 = vcvt.s32.f32 %v1895_v21  ;;  %s1588_s8 = scalar_lea.hbm %s1587_s6, 8  ;;  %p1593_p3 = scmp.lt.s32.totalorder %s1587_s6, %s1972_s7 }
  0x84   : > { %782 = vmatpush.bf16.msrb.mxu0 %v1347_v36  ;;  %610 = vmatmul.bf16.vlgmr.msra.gmra.mxu1 %v389_v39  ;;  %p1589_p0 = scmp.ne.s32.totalorder %s1587_s6, %s1588_s8  ;;  %p1594_p4 = scmp.lt.s32.totalorder %s1592_s15, %s1588_s8 }
  0x85   : > { %796 = vmatpush.bf16.msrb.mxu1 %v1355_v38  ;;  %624 = vmatmul.bf16.vlgmr.msra.gmra.mxu2 %v388_v37 }
  0x86   : > { %638 = vmatmul.bf16.vlgmr.msra.gmra.mxu3 %v389_v39  ;;  %p1590_p1 = pnand %p1589_p0, %p1800_p5  ;;  %p1595_p7 = por %p1594_p4, %p1593_p3 }
  0x88   : > { %783 = vmatpush.bf16.msrb.mxu0 %v1346_v40  ;;  %863 = vperm.xlu2 %1465, %v858_v17   ;;  %p1591_p2 = pneg %p1590_p1 }
  0x89   : > { %797 = vmatpush.bf16.msrb.mxu1 %v1354_v41 }
  0x8a   : > { %p1596_p8 = pnand %p1595_p7, %p1591_p2 }
  0x8c   : > { %784 = vmatpush.bf16.msrb.mxu0 %v1345_v42 }
  0x8d   : > { %798 = vmatpush.bf16.msrb.mxu1 %v1353_v44 }
  0x90   : > { %785 = vmatpush.bf16.msrb.mxu0 %v1344_v43 }
  0x91   : > { %799 = vmatpush.bf16.msrb.mxu1 %v1352_v46 }
  0x94   : > { %786 = vmatpush.bf16.msrb.mxu0 %v1343_v45 }
  0x95   : > { %800 = vmatpush.bf16.msrb.mxu1 %v1351_v48 }
  0x98   : > { %787 = vmatpush.bf16.msrb.mxu0 %v1342_v47 }
  0x99   : > { %801 = vmatpush.bf16.msrb.mxu1 %v1350_v50 }
  0x9c   : > { %788 = vmatpush.bf16.msrb.mxu0 %v1341_v49 }
  0x9d   : > { %802 = vmatpush.bf16.msrb.mxu1 %v1349_v52 }
  0xa0   : > { %789 = vmatpush.bf16.msrb.mxu0 %v1340_v51 }
  0xa1   : > { %803 = vmatpush.bf16.msrb.mxu1 %v1348_v53 }
  0xda   : > { %v861_v44 = vpop.permute.xlu2 %860 }
  0xdb   : > { %vm865_vm5 = vcmp.eq.s32.totalorder %v1895_v21, %v861_v44 }
  0xe2   : > { %v864_v46 = vpop.permute.xlu2 %863 }
  0xe3   : > { %vm866_vm7 = vcmp.eq.s32.totalorder %v1895_v21, %v864_v46 }
 0x100   : > { %v597_v55 = vpop.f32.mrf.mxu0 }
 0x101   : > { %v611_v57 = vpop.f32.mrf.mxu1  ;;  %v598_v58 = vadd.f32 %v597_v55, %v424_v56 }
 0x103   : > { %v612_v63 = vadd.f32 %v611_v57, %v598_v58 }
 0x105   : > { %v644_v4 = vmax.f32 %v612_v63, 0.0 }
 0x108   : > { %v625_v59 = vpop.f32.mrf.mxu2  ;;  %v599_v62 = vpop.f32.mrf.mxu0 }
 0x109   : > { %v639_v61 = vpop.f32.mrf.mxu3  ;;  %v600_v0 = vadd.f32 %v599_v62, %v424_v56  ;;  %v613_v1 = vpop.f32.mrf.mxu1  ;;  %v626_v3 = vadd.f32 %v625_v59, %v425_v60 }
 0x10b   : > { %v614_v2 = vadd.f32 %v613_v1, %v600_v0  ;;  %v640_v8 = vadd.f32 %v639_v61, %v626_v3 }
 0x10d   : > { %v646_v5 = vmax.f32 %v614_v2, 0.0  ;;  %v645_v12 = vmax.f32 %v640_v8, 0.0 }
 0x10f   : > { %v648_v6 = vpack.c.bf16 %v646_v5, %v644_v4 }
 0x110   : > { %v627_v7 = vpop.f32.mrf.mxu2 }
 0x111   : > { %v628_v9 = vadd.f32 %v627_v7, %v425_v60  ;;  %v641_v10 = vpop.f32.mrf.mxu3  ;;  %790 = vmatmul.bf16.vlgmr.msrb.gmra.mxu0 %v648_v6 }
 0x113   : > { %v642_v11 = vadd.f32 %v641_v10, %v628_v9 }
 0x115   : > { %v647_v13 = vmax.f32 %v642_v11, 0.0 }
 0x117   : > { %v649_v14 = vpack.c.bf16 %v647_v13, %v645_v12 }
 0x119   : > { %804 = vmatmul.bf16.vlgmr.msrb.gmra.mxu1 %v649_v14 }
 0x18e   : > { %v791_v19 = vpop.f32.mrf.mxu0 }
 0x18f   : > { %v792_v22 = vadd.f32 %v1467_v20, %v791_v19 }
 0x196   : > { %v805_v23 = vpop.f32.mrf.mxu1  ;;  %v793_v26 = vpop.f32.mrf.mxu0 }
 0x197   : > { %v806_v24 = vadd.f32 %v805_v23, %v792_v22  ;;  %v794_v27 = vadd.f32 %v1467_v20, %v793_v26 }
 0x199   : > { %v813_v25 = vsel %vm812_vm0, %v806_v24, -1e+30 }
 0x19a   : > { %815 = vmax.xlane.f32.xlu0 %v813_v25 }
 0x19e   : > { %v807_v28 = vpop.f32.mrf.mxu1 }
 0x19f   : > { %v808_v29 = vadd.f32 %v807_v28, %v794_v27 }
 0x1a1   : > { %v814_v30 = vsel %vm812_vm0, %v808_v29, -1e+30 }
 0x1a2   : > { %817 = vmax.xlane.f32.xlu0 %v814_v30 }
 0x20d   : > { %v816_v31 = vpop.xlane.xlu0 %815 }
 0x20e   : > { %v819_v32 = vsub.f32 %v813_v25, %v816_v31  ;;  %vm844_vm2 = vcmp.eq.f32.partialorder %v813_v25, %v816_v31 }
 0x20f   : > { %v846_v43 = vsel %vm844_vm2, %v843_v35, 128.0 }
 0x210   : > { %v821_v33 = vmul.f32 1.442695, %v819_v32 }
 0x212   : > { %1468 = vpow2.f32 %v821_v33 }
 0x215   : > { %v818_v34 = vpop.xlane.xlu0 %817 }
 0x216   : > { %v820_v36 = vsub.f32 %v814_v30, %v818_v34  ;;  %vm845_vm1 = vcmp.eq.f32.partialorder %v814_v30, %v818_v34 }
 0x217   : > { %v847_v37 = vsel %vm845_vm1, %v843_v35, 128.0 }
 0x218   : > { %v1469_v38 = vpop.eup %1468  ;;  %v823_v39 = vmul.f32 1.442695, %v820_v36  ;;  %850 = vmin.xlane.f32.xlu2 %v847_v37 }
 0x219   : > { %v825_v40 = vsel %vm812_vm0, %v1469_v38, 0.0 }
 0x21a   : > { %1470 = vpow2.f32 %v823_v39  ;;  %827 = vadd.xlane.f32.xlu1 %v825_v40 }
 0x220   : > { %v1471_v41 = vpop.eup %1470 }
 0x221   : > { %v826_v42 = vsel %vm812_vm0, %v1471_v41, 0.0 }
 0x222   : > { %829 = vadd.xlane.f32.xlu1 %v826_v42 }
 0x22a   : > { %848 = vmin.xlane.f32.xlu1 %v846_v43 }
 0x28b   : > { %v851_v50 = vpop.xlane.xlu2 %850 }
 0x28c   : > { %v1368_v51 = vceil.f32 %v851_v50  ;;  %v1369_v52 = vfloor.f32 %v851_v50  ;;  %vm1367_vm3 = vcmp.lt.s32.totalorder %v851_v50, 0 }
 0x28d   : > { %v828_v45 = vpop.xlane.xlu1 %827 }
 0x28e   : > { %1472 = vlog2.f32 %v828_v45  ;;  %v1370_v59 = vsel %vm1367_vm3, %v1368_v51, %v1369_v52 }
 0x28f   : > { %v1371_v1 = vcvt.f32.s32 %v1370_v59 }
 0x291   : > { %856 = vst.msk [vmem:[%s1849_s20 + $0x8] sm:$0xff] %vm854_vm6, %v1371_v1 }
 0x294   : > { %v1473_v47 = vpop.eup %1472 }
 0x295   : > { %v830_v48 = vpop.xlane.xlu1 %829  ;;  %v832_v49 = vmul.f32 0.6931472, %v1473_v47 }
 0x296   : > { %1474 = vlog2.f32 %v830_v48 }
 0x297   : > { %v835_v53 = vadd.f32 %v832_v49, %v816_v31 }
 0x299   : > { %v837_v61 = vsub.f32 %v813_v25, %v835_v53 }
 0x29b   : > { %v867_v2 = vsel %vm865_vm5, %v837_v61, 0.0 }
 0x29c   : > { %v1475_v54 = vpop.eup %1474 }
 0x29d   : > { %v834_v55 = vmul.f32 0.6931472, %v1475_v54  ;;  %v849_v56 = vpop.xlane.xlu1 %848 }
 0x29e   : > { %vm1362_vm4 = vcmp.lt.s32.totalorder %v849_v56, 0  ;;  %v1363_v57 = vceil.f32 %v849_v56  ;;  %v1364_v58 = vfloor.f32 %v849_v56 }
 0x29f   : > { %v836_v60 = vadd.f32 %v834_v55, %v818_v34 }
 0x2a0   : > { %v1365_v62 = vsel %vm1362_vm4, %v1363_v57, %v1364_v58 }
 0x2a1   : > { %v1366_v63 = vcvt.f32.s32 %v1365_v62  ;;  %v838_v0 = vsub.f32 %v814_v30, %v836_v60 }
 0x2a3   : > { %855 = vst.msk [vmem:[%s1849_s20] sm:$0xff] %vm854_vm6, %v1366_v63  ;;  %v868_v3 = vsel %vm866_vm7, %v838_v0, 0.0  ;;  %v1360_v4 = vpack.c.bf16 %v838_v0, %v837_v61 }
 0x2a4   : > { %v869_v5 = vadd.f32 %v868_v3, %v867_v2 }
 0x2a5   : > { %1361 = vst [vmem:[%s1851_s25] sm:$0xff] %v1360_v4  }
 0x2a6   : > { %870 = vadd.xlane.f32.xlu0 %v869_v5 }
 0x2a7   : > { %1599 = shalt.err (!%p1596_p8)
}
 0x2a8   : > { %s1707_s25 = smov 64   ;;  %s1708_s23 = smov 4  }
 0x2a9   : > { %1382 = dma.vmem_to_hbm [thread:$0]  (%p1800_p5), %s907_s17, 128, %s909_s19, %s884_s30, %s1707_s25, %s1707_s25, %s1708_s23  }
 0x2aa   : > { %s925_s4 = scalar_lea.hbm %s1974_s9, %s1356_s12  ;;  %s927_s13 = sshll.u32 %s1853_s26, 4  ;;  %s928_s13 = int_to_ptr.vmem [resolvable:$true] %s927_s13 }
 0x2ab   : > { %s929_s29 = sshll.u32 %s925_s4, 4  ;;  %s894_s11 = scalar_lea.sflag [#allocation13], %s1836_s27  ;;  %s930_s29 = int_to_ptr.hbm [resolvable:$true] %s929_s29 }
 0x2ac   : > { %s1614_s17 = sshra.s32 %s930_s29, 4  ;;  %s1620_s12 = scalar_lea.hbm %s1974_s9, 16  ;;  %s1615_s17 = int_to_ptr.hbm [resolvable:$true] %s1614_s17 }
 0x2ad   : > { %s1616_s19 = scalar_lea.hbm %s1615_s17, 8  ;;  %p1621_p12 = scmp.lt.s32.totalorder %s1615_s17, %s1974_s9 }
 0x2ae   : > { %p1617_p9 = scmp.ne.s32.totalorder %s1615_s17, %s1616_s19  ;;  %p1622_p13 = scmp.lt.s32.totalorder %s1620_s12, %s1616_s19 }
 0x2b0   : > { %p1618_p10 = pnand %p1617_p9, %p1800_p5  ;;  %p1623_p0 = por %p1622_p13, %p1621_p12 }
 0x2b2   : > { %p1619_p11 = pneg %p1618_p10 }
 0x2b4   : > { %p1624_p1 = pnand %p1623_p0, %p1619_p11 }
 0x319   : > { %v871_v6 = vpop.xlane.xlu0 %870 }
 0x31a   : > { %v872_v7 = vrot.slane %v871_v6, 4 }
 0x31c   : > { %v873_v8 = vadd.f32 %v872_v7, %v871_v6 }
 0x31e   : > { %v874_v9 = vrot.slane %v873_v8, 2 }
 0x320   : > { %v875_v10 = vadd.f32 %v874_v9, %v873_v8 }
 0x322   : > { %v876_v11 = vrot.slane %v875_v10, 1 }
 0x324   : > { %v877_v12 = vadd.f32 %v876_v11, %v875_v10 }
 0x326   : > { %1372 = vpush %v877_v12 }
 0x357   : > { %s1373_s24 = spop %1372 }
 0x358   : > { %s879_s10 = ssub.f32 0.0, %s1373_s24 }
 0x35a   : > { %v880_v13 = vstv %s879_s10 }
 0x35b   : > { %882 = vst [vmem:[%s1853_s26] sm:$0xff] %v880_v13 }
 0x35c   : > { %1627 = shalt.err (!%p1624_p1)
}
 0x35d   : > { %1383 = dma.vmem_to_hbm [thread:$0]  (%p1800_p5), %s928_s13, 128, %s930_s29, %s894_s11  }
 0x35e PF: > { %s1998_s27 = sld [smem:[#allocation21_spill]]  ;;  %p1404_p2 = scmp.ge.s32.totalorder %s1686_s16, 2 }
 0x360   : > { %p1394_p3 = pnand %p1404_p2, %p1804_p6 }
 0x362   : > { %p1395_p4 = pneg %p1394_p3 }
 0x364   : > { %s941_s20 = sand.u32 1, %s1998_s27  }
 0x365   : > { %s942_s14 = scalar_lea.sflag [#allocation8], %s941_s20 }
 0x366   : > { %1665 = dma.done.wait (%p1395_p4), %s942_s14, 128  }
 0x367   : > { %1667 = vsyncadd (%p1395_p4), %s942_s14, 4294967168  ;;  %s960_s15 = scalar_lea.sflag [#allocation13], %s941_s20 }
 0x368   : > { %1669 = dma.done.wait (%p1395_p4), %s960_s15, 128  }
 0x369   : > { %1671 = vsyncadd (%p1395_p4), %s960_s15, 4294967168  ;;  %s2000_s16 = sld [smem:[#allocation24_spill]] }
 0x36a   : > { %s2001_s13 = sld [smem:[#allocation22_spill]] }
 0x36b   : > { %s2002_s14 = sld [smem:[#allocation23_spill]] }
 0x36c   : > { %s2003_s15 = sld [smem:[#allocation25_spill]] }
 0x36f   : > { %p33_p5 = scmp.ge.s32.totalorder %s2000_s16, 4  }
 0x371   :  { %35 = sbr.rel (!%p33_p5) target bundleno = 16 (0x10), region = 151 }
 0x376   :  { %966 = vsyncpa [#allocation7], 1 }
 0x377   :  { %968 = vsyncpa [#allocation7 + $0x1], 1 }
 0x378   :  { %969 = vsyncpa [#allocation10], 1 }
 0x379   :  { %970 = vsyncpa [#allocation8], 1 }
 0x37a   :  { %972 = vsyncpa [#allocation8 + $0x1], 1 }
 0x37b   :  { %973 = vsyncpa [#allocation13], 1 }
 0x37c   :  { %975 = vsyncpa [#allocation13 + $0x1], 1 }
 0x37d   :  { %976 = vsyncmov [#allocation3] }
 0x380   :  { %s977_s22 = vpop.sfrf %976 }
 0x381   :  { %p1307_p6 = scmp.ne.s32.totalorder %s977_s22, 0 }
 0x383   :  { %981 = shalt.err (%p1307_p6)  }

</bundles_post_ra>
